<compile_context>
chip_gen: v5e
topology: v5e:2x2
jax: 0.10.0
libtpu: 0.0.40
codegen_flags: <defaults>
</compile_context>

<pallas_src>
import math
import functools

import jax
import jax.numpy as jnp
from jax import lax
from jax.experimental import pallas as pl
from jax.experimental.pallas import tpu as pltpu  # noqa: F401  (TPU backend)


def _attention_math(x_q, x_h, wq, wkT, wv, wo, head_mask, batch_bias, *, n_heads):
    """Shared attention math on VMEM-resident f32 values.

    x_q:  (N, E)  flattened queries  (N = batch * n_query)
    x_h:  (M, E)  flattened keys/values source (M = batch * graph_size)
    wq:   (E, H*Kd)   norm_factor already folded in
    wkT:  (H*Kd, E)   per-head K^T projector
    wv:   (E, H*Vd)
    wo:   (H*Vd, E)
    head_mask:  (H, 1, H*Kd) 0/1 block-diagonal head selector (Kd == Vd)
    batch_bias: (1, N, M)    0 / -1e30 cross-batch additive mask
    """
    H = n_heads
    N = x_q.shape[0]
    M = x_h.shape[0]

    # --- projections: one lane-dense MXU matmul each --------------------------------
    qh = jnp.dot(x_q, wq, preferred_element_type=jnp.float32)                 # (N, H*Kd)
    # K lands directly in its pre-transposed (H*Kd, M) layout by contracting E
    # (the last dim of both operands) -- no K transposes downstream.
    kT = lax.dot_general(wkT, x_h, (((1,), (1,)), ((), ())),
                         preferred_element_type=jnp.float32)                  # (H*Kd, M)
    v = jnp.dot(x_h, wv, preferred_element_type=jnp.float32)                  # (M, H*Vd)

    HK = qh.shape[1]
    HV = v.shape[1]

    # --- all heads' scores in ONE matmul ---------------------------------------------
    # Row block h of qblk carries head h's Kd columns (zeros elsewhere), so qblk @ kT
    # stacks every head's (N, M) score tile along the sublane axis.
    qblk = (qh[None, :, :] * head_mask).reshape(H * N, HK)                    # (H*N, H*Kd)
    s = jnp.dot(qblk, kT, preferred_element_type=jnp.float32)                 # (H*N, M)

    # --- ONE merged softmax over every (head, query) row ------------------------------
    s = s.reshape(H, N, M) + batch_bias        # cross-batch keys -> -1e30 -> exp == 0.0
    s = s - jnp.max(s, axis=-1, keepdims=True)
    e = jnp.exp(s)                                                            # (H, N, M)
    denom = jnp.sum(e, axis=-1, keepdims=True)                                # (H, N, 1)

    # --- all heads' PV in ONE matmul, deferred normalization --------------------------
    pv = jnp.dot(e.reshape(H * N, M), v, preferred_element_type=jnp.float32)  # (H*N, H*Vd)
    pv = pv.reshape(H, N, HV) * head_mask        # keep each row-block's own head columns
    pv = pv * pl.reciprocal(denom, approx=False)  # approx=True -> EUP slot if tol allows

    # Sum the head blocks down to the concat-of-heads (N, H*Vd) layout.  Unrolled adds
    # over the leading (non-layout) axis -- same codegen as jnp.sum(axis=0).
    heads = pv[0]
    for hh in range(1, H):
        heads = heads + pv[hh]                                                # (N, H*Vd)

    # --- output projection -------------------------------------------------------------
    return jnp.dot(heads, wo, preferred_element_type=jnp.float32)             # (N, E)


def mha_self_kernel(q_ref, wq_ref, wkT_ref, wv_ref, wo_ref, mask_ref, bias_ref, o_ref,
                    *, n_heads):
    # Self-attention fast path (module default h=None): q's block feeds Q, K and V.
    x = q_ref[...]
    o_ref[...] = _attention_math(
        x, x, wq_ref[...], wkT_ref[...], wv_ref[...], wo_ref[...],
        mask_ref[...], bias_ref[...], n_heads=n_heads,
    ).astype(o_ref.dtype)


def mha_cross_kernel(q_ref, h_ref, wq_ref, wkT_ref, wv_ref, wo_ref, mask_ref, bias_ref,
                     o_ref, *, n_heads):
    o_ref[...] = _attention_math(
        q_ref[...], h_ref[...], wq_ref[...], wkT_ref[...], wv_ref[...], wo_ref[...],
        mask_ref[...], bias_ref[...], n_heads=n_heads,
    ).astype(o_ref.dtype)


def multi_head_attention(q, h, w_query, w_key, w_value, w_out):
    """Forward pass of MultiHeadAttention (mask=None path). `h` may be None (self-attn)."""
    B, Nq, E = q.shape
    H, _, Kd = w_query.shape
    Vd = w_value.shape[-1]
    assert Kd == Vd, "module always sets value_dim == key_dim"
    norm = 1.0 / math.sqrt(Kd)

    self_attn = (h is None) or (h is q)
    if self_attn:
        h = q
    _, T, _ = h.shape
    N, M = B * Nq, B * T

    f32 = jnp.float32
    q2 = q.reshape(N, E).astype(f32)

    # Wrapper-side weight fusion (free XLA reshapes/transposes, done once).
    wq_slab = (jnp.transpose(w_query, (1, 0, 2)).reshape(E, H * Kd) * norm).astype(f32)
    wkT_slab = jnp.transpose(w_key, (0, 2, 1)).reshape(H * Kd, E).astype(f32)  # K^T projector
    wv_slab = jnp.transpose(w_value, (1, 0, 2)).reshape(E, H * Vd).astype(f32)
    wo_slab = w_out.reshape(H * Vd, E).astype(f32)

    # Tiny constant masks, built once outside the kernel.
    #   head_mask[h, 0, c] = 1 iff column c belongs to head h (block-diagonal selector,
    #   reused for the stacked-Q build and the post-PV head extraction since Kd == Vd).
    head_ids = jnp.arange(H, dtype=jnp.int32)
    col_head = jnp.arange(H * Kd, dtype=jnp.int32) // Kd
    head_mask = (col_head[None, :] == head_ids[:, None]).astype(f32)[:, None, :]  # (H,1,H*Kd)
    #   batch_bias[0, n, m] = 0 if query row n and key m come from the same batch item,
    #   else -1e30 (exp underflows to exactly 0, excluding cross-batch attention).
    row_b = jnp.arange(N, dtype=jnp.int32) // Nq
    col_b = jnp.arange(M, dtype=jnp.int32) // T
    batch_bias = jnp.where(row_b[:, None] == col_b[None, :], 0.0, -1e30)
    batch_bias = batch_bias.astype(f32)[None, :, :]                               # (1, N, M)

    if self_attn:
        kernel = functools.partial(mha_self_kernel, n_heads=H)
        operands = (q2,)
    else:
        kernel = functools.partial(mha_cross_kernel, n_heads=H)
        operands = (q2, h.reshape(M, E).astype(f32))

    # Single kernel invocation (no grid): every operand is a few KiB, so the whole
    # problem lives in VMEM and each array is DMA'd exactly once.  Default VMEM limit
    # is ample; no compiler_params tuning needed at these shapes.
    out2 = pl.pallas_call(
        kernel,
        out_shape=jax.ShapeDtypeStruct((N, E), q.dtype),
    )(*operands, wq_slab, wkT_slab, wv_slab, wo_slab, head_mask, batch_bias)

    return out2.reshape(B, Nq, E)


def mha_reference(q, h, w_query, w_key, w_value, w_out):
    """Pure-JAX reference mirroring the PyTorch forward (mask=None)."""
    H, E, Kd = w_query.shape
    norm = 1.0 / math.sqrt(Kd)
    Q = jnp.einsum('bqe,hek->hbqk', q, w_query)
    K = jnp.einsum('bte,hek->hbtk', h, w_key)
    V = jnp.einsum('bte,hev->hbtv', h, w_value)
    U = norm * jnp.einsum('hbqk,hbtk->hbqt', Q, K)
    A = jax.nn.softmax(U, axis=-1)
    heads = jnp.einsum('hbqt,hbtv->hbqv', A, V)
    return jnp.einsum('hbqv,hve->bqe', heads, w_out)


if __name__ == "__main__":
    # Small, module-consistent shapes.
    batch = 2
    n_query = 8
    graph_size = 16        # used only by the cross-attention (explicit h) check
    embedding_dim = 32
    n_heads = 8
    key_dim = embedding_dim // n_heads   # 4
    value_dim = key_dim

    key = jax.random.PRNGKey(0)
    kq, kh, kwq, kwk, kwv, kwo = jax.random.split(key, 6)

    q = jax.random.normal(kq, (batch, n_query, embedding_dim), dtype=jnp.float32)

    def init_w(k, shape):
        stdv = 1.0 / math.sqrt(shape[-1])
        return jax.random.uniform(k, shape, dtype=jnp.float32, minval=-stdv, maxval=stdv)

    w_query = init_w(kwq, (n_heads, embedding_dim, key_dim))
    w_key = init_w(kwk, (n_heads, embedding_dim, key_dim))
    w_value = init_w(kwv, (n_heads, embedding_dim, value_dim))
    w_out = init_w(kwo, (n_heads, value_dim, embedding_dim))

    # Module-default path: forward(q) with h=None -> self-attention fast path.
    out = multi_head_attention(q, None, w_query, w_key, w_value, w_out)
    out = jax.block_until_ready(out)
    ref = mha_reference(q, q, w_query, w_key, w_value, w_out)
    assert out.shape == (batch, n_query, embedding_dim)
    assert jnp.allclose(out, ref, atol=1e-5, rtol=1e-5), "self-attention mismatch vs reference"

    # General path: explicit h (cross-attention), different graph_size.
    h = jax.random.normal(kh, (batch, graph_size, embedding_dim), dtype=jnp.float32)
    out_x = multi_head_attention(q, h, w_query, w_key, w_value, w_out)
    out_x = jax.block_until_ready(out_x)
    ref_x = mha_reference(q, h, w_query, w_key, w_value, w_out)
    assert jnp.allclose(out_x, ref_x, atol=1e-5, rtol=1e-5), "cross-attention mismatch vs reference"

    print("KERNEL_OK")
</pallas_src>

<mosaic_0001>
module attributes {stable_mosaic.version = 11 : i64} {
  func.func @mha_self_kernel(%arg0: memref<16x32xf32, #tpu.memory_space<vmem>>, %arg1: memref<32x32xf32, #tpu.memory_space<vmem>>, %arg2: memref<32x32xf32, #tpu.memory_space<vmem>>, %arg3: memref<32x32xf32, #tpu.memory_space<vmem>>, %arg4: memref<32x32xf32, #tpu.memory_space<vmem>>, %arg5: memref<8x1x32xf32, #tpu.memory_space<vmem>>, %arg6: memref<1x16x16xf32, #tpu.memory_space<vmem>>, %arg7: memref<16x32xf32, #tpu.memory_space<vmem>>) attributes {dimension_semantics = [], scalar_prefetch = 0 : i64, scratch_operands = 0 : i64, tpu.core_type = #tpu.core_type<tc>} {
    %c0 = arith.constant 0 : index
    %c0_0 = arith.constant 0 : index
    %0 = vector.load %arg0[%c0, %c0_0] : memref<16x32xf32, #tpu.memory_space<vmem>>, vector<16x32xf32>
    %c0_1 = arith.constant 0 : index
    %c0_2 = arith.constant 0 : index
    %1 = vector.load %arg1[%c0_1, %c0_2] : memref<32x32xf32, #tpu.memory_space<vmem>>, vector<32x32xf32>
    %c0_3 = arith.constant 0 : index
    %c0_4 = arith.constant 0 : index
    %2 = vector.load %arg2[%c0_3, %c0_4] : memref<32x32xf32, #tpu.memory_space<vmem>>, vector<32x32xf32>
    %c0_5 = arith.constant 0 : index
    %c0_6 = arith.constant 0 : index
    %3 = vector.load %arg3[%c0_5, %c0_6] : memref<32x32xf32, #tpu.memory_space<vmem>>, vector<32x32xf32>
    %c0_7 = arith.constant 0 : index
    %c0_8 = arith.constant 0 : index
    %4 = vector.load %arg4[%c0_7, %c0_8] : memref<32x32xf32, #tpu.memory_space<vmem>>, vector<32x32xf32>
    %c0_9 = arith.constant 0 : index
    %c0_10 = arith.constant 0 : index
    %c0_11 = arith.constant 0 : index
    %5 = vector.load %arg5[%c0_9, %c0_10, %c0_11] : memref<8x1x32xf32, #tpu.memory_space<vmem>>, vector<8x1x32xf32>
    %c0_12 = arith.constant 0 : index
    %c0_13 = arith.constant 0 : index
    %c0_14 = arith.constant 0 : index
    %6 = vector.load %arg6[%c0_12, %c0_13, %c0_14] : memref<1x16x16xf32, #tpu.memory_space<vmem>>, vector<1x16x16xf32>
    %cst = arith.constant dense<0.000000e+00> : vector<16x32xf32>
    %7 = tpu.matmul %0, %1, %cst {dimension_numbers = #tpu.dot_dimension_numbers<[1], [0], [0], [1], [0, 0, 1, 1], [], []>} : vector<16x32xf32>, vector<32x32xf32>, vector<16x32xf32> -> vector<16x32xf32>
    %cst_15 = arith.constant dense<0.000000e+00> : vector<32x16xf32>
    %8 = tpu.matmul %2, %0, %cst_15 {dimension_numbers = #tpu.dot_dimension_numbers<[1], [1], [0], [0], [0, 0, 1, 0], [], []>} : vector<32x32xf32>, vector<16x32xf32>, vector<32x16xf32> -> vector<32x16xf32>
    %cst_16 = arith.constant dense<0.000000e+00> : vector<16x32xf32>
    %9 = tpu.matmul %0, %3, %cst_16 {dimension_numbers = #tpu.dot_dimension_numbers<[1], [0], [0], [1], [0, 0, 1, 1], [], []>} : vector<16x32xf32>, vector<32x32xf32>, vector<16x32xf32> -> vector<16x32xf32>
    %10 = vector.shape_cast %7 : vector<16x32xf32> to vector<1x16x32xf32>
    %11 = vector.broadcast %10 : vector<1x16x32xf32> to vector<8x16x32xf32>
    %12 = vector.broadcast %5 : vector<8x1x32xf32> to vector<8x16x32xf32>
    %13 = arith.mulf %11, %12 : vector<8x16x32xf32>
    %14 = vector.shape_cast %13 : vector<8x16x32xf32> to vector<128x32xf32>
    %cst_17 = arith.constant dense<0.000000e+00> : vector<128x16xf32>
    %15 = tpu.matmul %14, %8, %cst_17 {dimension_numbers = #tpu.dot_dimension_numbers<[1], [0], [0], [1], [0, 0, 1, 1], [], []>} : vector<128x32xf32>, vector<32x16xf32>, vector<128x16xf32> -> vector<128x16xf32>
    %16 = vector.shape_cast %15 : vector<128x16xf32> to vector<8x16x16xf32>
    %17 = vector.broadcast %6 : vector<1x16x16xf32> to vector<8x16x16xf32>
    %18 = arith.addf %16, %17 : vector<8x16x16xf32>
    %cst_18 = arith.constant dense<0xFF800000> : vector<8x16xf32>
    %19 = vector.multi_reduction <maximumf>, %18, %cst_18 [2] : vector<8x16x16xf32> to vector<8x16xf32>
    %20 = vector.shape_cast %19 : vector<8x16xf32> to vector<8x16x1xf32>
    %21 = vector.broadcast %20 : vector<8x16x1xf32> to vector<8x16x16xf32>
    %22 = arith.subf %18, %21 : vector<8x16x16xf32>
    %23 = math.exp %22 : vector<8x16x16xf32>
    %cst_19 = arith.constant dense<0.000000e+00> : vector<8x16xf32>
    %24 = vector.multi_reduction <add>, %23, %cst_19 [2] : vector<8x16x16xf32> to vector<8x16xf32>
    %25 = vector.shape_cast %24 : vector<8x16xf32> to vector<8x16x1xf32>
    %26 = vector.shape_cast %23 : vector<8x16x16xf32> to vector<128x16xf32>
    %cst_20 = arith.constant dense<0.000000e+00> : vector<128x32xf32>
    %27 = tpu.matmul %26, %9, %cst_20 {dimension_numbers = #tpu.dot_dimension_numbers<[1], [0], [0], [1], [0, 0, 1, 1], [], []>} : vector<128x16xf32>, vector<16x32xf32>, vector<128x32xf32> -> vector<128x32xf32>
    %28 = vector.shape_cast %27 : vector<128x32xf32> to vector<8x16x32xf32>
    %29 = vector.broadcast %5 : vector<8x1x32xf32> to vector<8x16x32xf32>
    %30 = arith.mulf %28, %29 : vector<8x16x32xf32>
    %31 = tpu.reciprocal %25 : vector<8x16x1xf32> -> vector<8x16x1xf32>
    %32 = vector.broadcast %31 : vector<8x16x1xf32> to vector<8x16x32xf32>
    %33 = arith.mulf %30, %32 : vector<8x16x32xf32>
    %34 = vector.extract_strided_slice %33 {offsets = [0, 0, 0], sizes = [1, 16, 32], strides = [1, 1, 1]} : vector<8x16x32xf32> to vector<1x16x32xf32>
    %35 = vector.shape_cast %34 : vector<1x16x32xf32> to vector<16x32xf32>
    %36 = vector.extract_strided_slice %33 {offsets = [1, 0, 0], sizes = [1, 16, 32], strides = [1, 1, 1]} : vector<8x16x32xf32> to vector<1x16x32xf32>
    %37 = vector.shape_cast %36 : vector<1x16x32xf32> to vector<16x32xf32>
    %38 = arith.addf %35, %37 : vector<16x32xf32>
    %39 = vector.extract_strided_slice %33 {offsets = [2, 0, 0], sizes = [1, 16, 32], strides = [1, 1, 1]} : vector<8x16x32xf32> to vector<1x16x32xf32>
    %40 = vector.shape_cast %39 : vector<1x16x32xf32> to vector<16x32xf32>
    %41 = arith.addf %38, %40 : vector<16x32xf32>
    %42 = vector.extract_strided_slice %33 {offsets = [3, 0, 0], sizes = [1, 16, 32], strides = [1, 1, 1]} : vector<8x16x32xf32> to vector<1x16x32xf32>
    %43 = vector.shape_cast %42 : vector<1x16x32xf32> to vector<16x32xf32>
    %44 = arith.addf %41, %43 : vector<16x32xf32>
    %45 = vector.extract_strided_slice %33 {offsets = [4, 0, 0], sizes = [1, 16, 32], strides = [1, 1, 1]} : vector<8x16x32xf32> to vector<1x16x32xf32>
    %46 = vector.shape_cast %45 : vector<1x16x32xf32> to vector<16x32xf32>
    %47 = arith.addf %44, %46 : vector<16x32xf32>
    %48 = vector.extract_strided_slice %33 {offsets = [5, 0, 0], sizes = [1, 16, 32], strides = [1, 1, 1]} : vector<8x16x32xf32> to vector<1x16x32xf32>
    %49 = vector.shape_cast %48 : vector<1x16x32xf32> to vector<16x32xf32>
    %50 = arith.addf %47, %49 : vector<16x32xf32>
    %51 = vector.extract_strided_slice %33 {offsets = [6, 0, 0], sizes = [1, 16, 32], strides = [1, 1, 1]} : vector<8x16x32xf32> to vector<1x16x32xf32>
    %52 = vector.shape_cast %51 : vector<1x16x32xf32> to vector<16x32xf32>
    %53 = arith.addf %50, %52 : vector<16x32xf32>
    %54 = vector.extract_strided_slice %33 {offsets = [7, 0, 0], sizes = [1, 16, 32], strides = [1, 1, 1]} : vector<8x16x32xf32> to vector<1x16x32xf32>
    %55 = vector.shape_cast %54 : vector<1x16x32xf32> to vector<16x32xf32>
    %56 = arith.addf %53, %55 : vector<16x32xf32>
    %cst_21 = arith.constant dense<0.000000e+00> : vector<16x32xf32>
    %57 = tpu.matmul %56, %4, %cst_21 {dimension_numbers = #tpu.dot_dimension_numbers<[1], [0], [0], [1], [0, 0, 1, 1], [], []>} : vector<16x32xf32>, vector<32x32xf32>, vector<16x32xf32> -> vector<16x32xf32>
    %c0_22 = arith.constant 0 : index
    %c0_23 = arith.constant 0 : index
    %58 = vector.load %arg7[%c0_22, %c0_23] : memref<16x32xf32, #tpu.memory_space<vmem>>, vector<16x32xf32>
    tpu.vector_store %arg7[%c0_22, %c0_23], %57 {strides = array<i32>} : memref<16x32xf32, #tpu.memory_space<vmem>>, vector<16x32xf32>,
    return
  }
}

</mosaic_0001>

<bundles_post_ra>
// kernel: tpu_custom_call.1
= control target key start
LH: loop header
LB: loop body
LE: loop exit
PB: predicated region body
PF: predicated region fallthrough
CT: control target
= control target key end

     0   :  { %12 = vsyncpa [#allocation3], 0  ;;  %s2015_s0 = inlined_call_operand.hbm [shape: f32[16,32], index: 0, kind: input, shape index: {}]   ;;  %s2016_s1 = inlined_call_operand.hbm [shape: f32[32,32], index: 1, kind: input, shape index: {}]   ;;  %s2017_s2 = inlined_call_operand.hbm [shape: f32[32,32], index: 2, kind: input, shape index: {}]   ;;  %s2018_s3 = inlined_call_operand.hbm [shape: f32[32,32], index: 3, kind: input, shape index: {}]   ;;  %s2019_s4 = inlined_call_operand.hbm [shape: f32[32,32], index: 4, kind: input, shape index: {}]   ;;  %s2020_s5 = inlined_call_operand.hbm [shape: f32[8,1,32], index: 5, kind: input, shape index: {}]   ;;  %s2021_s6 = inlined_call_operand.hbm [shape: f32[1,16,16], index: 6, kind: input, shape index: {}]   ;;  %s2022_s7 = inlined_call_operand.hbm [shape: f32[16,32], index: 7, kind: output, shape index: {}]  }
   0x1   :  { %13 = vsyncpa [#allocation6], 0 }
   0x2   :  { %14 = vsyncpa [#allocation9], 0 }
   0x3   :  { %15 = vsyncpa [#allocation12], 0 }
   0x4   :  { %16 = vsyncpa [#allocation4], 0  ;;  %s34_s26 = sshll.u32 %s2016_s1, 4  ;;  %s1350_s27 = smov [#allocation5]   ;;  %s35_s26 = int_to_ptr.hbm [resolvable:$true] %s34_s26 }
   0x5   :  { %s36_s28 = sshll.u32 %s1350_s27, 4  ;;  %s60_s8 = sshll.u32 %s2018_s3, 4  ;;  %s37_s28 = int_to_ptr.vmem [resolvable:$true] %s36_s28  ;;  %s61_s8 = int_to_ptr.hbm [resolvable:$true] %s60_s8 }
   0x6   :  { %s1351_s9 = smov 128   ;;  %s1352_s10 = smov 8  }
   0x7   :  { %42 = dma.hbm_to_vmem [thread:$0]  %s35_s26, 512, %s37_s28, [#allocation6], %s1351_s9, %s1351_s9, %s1352_s10  }
   0x8   :  { %s1353_s11 = smov [#allocation8]   ;;  %s86_s1 = sshll.u32 %s2020_s5, 4  ;;  %s87_s1 = int_to_ptr.hbm [resolvable:$true] %s86_s1 }
   0x9   :  { %s62_s12 = sshll.u32 %s1353_s11, 4  ;;  %s1354_s3 = smov [#allocation11]   ;;  %s63_s12 = int_to_ptr.vmem [resolvable:$true] %s62_s12 }
   0xa   :  { %68 = dma.hbm_to_vmem [thread:$0]  %s61_s8, 512, %s63_s12, [#allocation9], %s1351_s9, %s1351_s9, %s1352_s10  }
   0xb   :  { %s88_s15 = sshll.u32 %s1354_s3, 4  ;;  %s21_s18 = sshll.u32 %s2015_s0, 4  ;;  %s89_s15 = int_to_ptr.vmem [resolvable:$true] %s88_s15  ;;  %s22_s18 = int_to_ptr.hbm [resolvable:$true] %s21_s18 }
   0xc   :  { %s1355_s19 = smov 16   ;;  %s1356_s20 = smov 1  }
   0xd   :  { %94 = dma.hbm_to_vmem [thread:$0]  %s87_s1, 128, %s89_s15, [#allocation12], %s1355_s19, %s1355_s19, %s1356_s20  }
   0xe   :  { %s1357_s21 = smov [#allocation2]   ;;  %s47_s24 = sshll.u32 %s2017_s2, 4  ;;  %s48_s24 = int_to_ptr.hbm [resolvable:$true] %s47_s24 }
   0xf   :  { %s23_s22 = sshll.u32 %s1357_s21, 4  ;;  %s73_s0 = sshll.u32 %s2019_s4, 4  ;;  %s24_s22 = int_to_ptr.vmem [resolvable:$true] %s23_s22  ;;  %s74_s0 = int_to_ptr.hbm [resolvable:$true] %s73_s0 }
  0x10   :  { %29 = dma.hbm_to_vmem [thread:$0]  %s22_s18, 256, %s24_s22, [#allocation3], %s1351_s9, %s1351_s9, %s1352_s10  }
  0x11   :  { %s1358_s27 = smov [#allocation7]   ;;  %s1359_s29 = smov [#allocation10]  }
  0x12   :  { %s49_s28 = sshll.u32 %s1358_s27, 4  ;;  %s75_s2 = sshll.u32 %s1359_s29, 4  ;;  %s50_s28 = int_to_ptr.vmem [resolvable:$true] %s49_s28  ;;  %s76_s2 = int_to_ptr.vmem [resolvable:$true] %s75_s2 }
  0x13   :  { %55 = dma.hbm_to_vmem [thread:$0]  %s48_s24, 512, %s50_s28, [#allocation6], %s1351_s9, %s1351_s9, %s1352_s10  }
  0x14   :  { %s99_s11 = sshll.u32 %s2021_s6, 4  ;;  %s1360_s4 = smov [#allocation13]   ;;  %s100_s11 = int_to_ptr.hbm [resolvable:$true] %s99_s11 }
  0x15   :  { %81 = dma.hbm_to_vmem [thread:$0]  %s74_s0, 512, %s76_s2, [#allocation9], %s1351_s9, %s1351_s9, %s1352_s10  }
  0x16   :  { %s101_s12 = sshll.u32 %s1360_s4, 4  ;;  %s102_s12 = int_to_ptr.vmem [resolvable:$true] %s101_s12 }
  0x17   :  { %107 = dma.hbm_to_vmem [thread:$0]  %s100_s11, 256, %s102_s12, [#allocation12], %s1351_s9, %s1351_s9, %s1352_s10  }
  0x18   :  { %1340 = dma.done.wait [#allocation3], 256  }
  0x19   :  { %1341 = vsyncadd [#allocation3], 4294967040 }
  0x1a   :  { %1342 = dma.done.wait [#allocation6], 1024  }
  0x1b   :  { %1343 = vsyncadd [#allocation6], 4294966272 }
  0x1c   :  { %1344 = dma.done.wait [#allocation9], 1024  }
  0x1d   :  { %1345 = vsyncadd [#allocation9], 4294966272 }
  0x1e   :  { %1346 = dma.done.wait [#allocation12], 384  }
  0x1f   :  { %1347 = vsyncadd [#allocation12], 4294966912  ;;  %vm164_vm0 = vcmask 261120   ;;  %v137_v0 = vld [vmem:[#allocation2 + $0x8] sm:$0xff]  ;;  %v136_v2 = vld [vmem:[#allocation2] sm:$0xff]  ;;  %vm427_vm1 = vcmask 130048  }
  0x20   :  { %1010 = vmatpush.xpose.msk.msra.mxu1 %vm164_vm0, %v137_v0  ;;  %v141_v1 = vld [vmem:[#allocation5 + $0x18] sm:$0xff]  ;;  %v140_v3 = vld [vmem:[#allocation5 + $0x10] sm:$0xff]  ;;  %v139_v4 = vld [vmem:[#allocation5 + $0x8] sm:$0xff]  ;;  %s1361_s6 = smov [#allocation14]   ;;  %s992_s3 = sshll.u32 %s2022_s7, 4  ;;  %s993_s3 = int_to_ptr.hbm [resolvable:$true] %s992_s3 }
  0x21   :  { %1052 = vmatpush.msra.mxu2 %v141_v1  ;;  %183 = vmatpush.msra.mxu0 %v141_v1  ;;  %v142_v5 = vld [vmem:[#allocation7] sm:$0xff]  ;;  %v143_v7 = vld [vmem:[#allocation7 + $0x8] sm:$0xff]  ;;  %v144_v8 = vld [vmem:[#allocation7 + $0x10] sm:$0xff]  ;;  %s990_s13 = sshll.u32 %s1361_s6, 4  ;;  %s991_s13 = int_to_ptr.vmem [resolvable:$true] %s990_s13 }
  0x22   :  { %v138_v6 = vld [vmem:[#allocation5] sm:$0xff]  ;;  %v145_v9 = vld [vmem:[#allocation7 + $0x18] sm:$0xff]  ;;  %v148_v11 = vld [vmem:[#allocation8 + $0x10] sm:$0xff] }
  0x23   :  { %1053 = vmatpush.msra.mxu2 %v140_v3  ;;  %184 = vmatpush.msra.mxu0 %v140_v3  ;;  %v149_v10 = vld [vmem:[#allocation8 + $0x18] sm:$0xff]  ;;  %v147_v12 = vld [vmem:[#allocation8 + $0x8] sm:$0xff]  ;;  %v146_v13 = vld [vmem:[#allocation8] sm:$0xff] }
  0x24   :  { %1011 = vmatpush.xpose.msk.msra.mxu1 %vm164_vm0, %v136_v2  ;;  %v1451_v18 = vld [vmem:[#allocation11] ss:$0 sm:$0xff]  ;;  %v1453_v19 = vld [vmem:[#allocation11 + $0x2] ss:$0 sm:$0xff]  ;;  %v1459_v24 = vld [vmem:[#allocation11 + $0x3] ss:$0 sm:$0xff] }
  0x25   :  { %1054 = vmatpush.msra.mxu2 %v139_v4  ;;  %185 = vmatpush.msra.mxu0 %v139_v4  ;;  %v1465_v27 = vld [vmem:[#allocation11 + $0x1] ss:$0 sm:$0xff]  ;;  %v1471_v30 = vld [vmem:[#allocation11 + $0x4] ss:$0 sm:$0xff]  ;;  %v1481_v35 = vld [vmem:[#allocation11 + $0x5] ss:$0 sm:$0xff] }
  0x26   :  { %v1487_v38 = vld [vmem:[#allocation11 + $0x6] ss:$0 sm:$0xff]  ;;  %v1493_v41 = vld [vmem:[#allocation11 + $0x7] ss:$0 sm:$0xff]  ;;  %v162_v46 = vld [vmem:[#allocation13] sm:$0xff] }
  0x27   :  { %1012 = vmatmul.msk.f32.vlgmr.msra.gmra.mxu1 %vm164_vm0, %v142_v5  ;;  %1055 = vmatpush.msra.mxu2 %v138_v6  ;;  %v163_v51 = vld [vmem:[#allocation13 + $0x8] sm:$0xff] }
  0x28   :  { %1009 = vmatmul.msk.f32.vlgmr.msra.gmra.mxu2 %vm164_vm0, %v137_v0  ;;  %186 = vmatpush.msra.mxu0 %v138_v6 }
  0x29   :  { %1008 = vmatmul.msk.f32.vlgmr.msra.gmra.mxu0 %vm164_vm0, %v136_v2  ;;  %247 = vmatpush.msrb.mxu2 %v149_v10 }
  0x2b   :  { %248 = vmatpush.msrb.mxu2 %v148_v11 }
  0x2d   :  { %249 = vmatpush.msrb.mxu2 %v147_v12 }
  0x2f   :  { %1013 = vmatmul.msk.f32.gmra.mxu1 %vm164_vm0, %v143_v7  ;;  %250 = vmatpush.msrb.mxu2 %v146_v13 }
  0x30   :  { %1016 = vmatmul.msk.f32.vlgmr.msrb.gmra.mxu2 %vm164_vm0, %v136_v2 }
  0x37   :  { %1014 = vmatmul.msk.f32.gmra.mxu1 %vm164_vm0, %v144_v8 }
  0x38   :  { %1017 = vmatmul.msk.f32.gmra.mxu2 %vm164_vm0, %v137_v0 }
  0x3f   :  { %1015 = vmatmul.msk.f32.gmra.mxu1 %vm164_vm0, %v145_v9 }
  0xa4   :  { %v223_v14 = vpop.f32.mrf.mxu1 }
  0xa6   :  { %v188_v20 = vpop.f32.mrf.mxu0 }
  0xa7   :  { %v282_v22 = vmul.f32 %v1451_v18, %v188_v20  ;;  %v288_v25 = vmul.f32 %v1459_v24, %v188_v20  ;;  %v284_v28 = vmul.f32 %v1465_v27, %v188_v20  ;;  %v290_v32 = vmul.f32 %v1471_v30, %v188_v20 }
  0xa8   :  { %v286_v33 = vmul.f32 %v1453_v19, %v188_v20  ;;  %v292_v36 = vmul.f32 %v1481_v35, %v188_v20  ;;  %v294_v39 = vmul.f32 %v1487_v38, %v188_v20  ;;  %v296_v42 = vmul.f32 %v1493_v41, %v188_v20 }
  0xab   :  { %v191_v21 = vpop.f32.mrf.mxu2 }
  0xac   :  { %v226_v15 = vpop.f32.mrf.mxu1  ;;  %v287_v23 = vmul.f32 %v1453_v19, %v191_v21  ;;  %v283_v26 = vmul.f32 %v1451_v18, %v191_v21  ;;  %v289_v29 = vmul.f32 %v1459_v24, %v191_v21  ;;  %v285_v31 = vmul.f32 %v1465_v27, %v191_v21 }
  0xad   :  { %v291_v34 = vmul.f32 %v1471_v30, %v191_v21  ;;  %v293_v37 = vmul.f32 %v1481_v35, %v191_v21  ;;  %v295_v40 = vmul.f32 %v1487_v38, %v191_v21  ;;  %v297_v43 = vmul.f32 %v1493_v41, %v191_v21 }
  0xb3   :  { %v252_v44 = vpop.f32.mrf.mxu2 }
  0xb4   :  { %v229_v16 = vpop.f32.mrf.mxu1 }
  0xbb   :  { %v255_v45 = vpop.f32.mrf.mxu2 }
  0xbc   :  { %v232_v17 = vpop.f32.mrf.mxu1  ;;  %634 = vmatpush.msrb.mxu0 %v255_v45  ;;  %1060 = vmatpush.msrb.mxu1 %v255_v45 }
  0xbd   :  { %358 = vmatpush.msra.mxu2 %v232_v17  ;;  %1056 = vmatpush.msra.mxu3 %v232_v17 }
  0xbe   :  { %635 = vmatpush.msrb.mxu0 %v252_v44  ;;  %1061 = vmatpush.msrb.mxu1 %v252_v44 }
  0xbf   :  { %359 = vmatpush.msra.mxu2 %v229_v16  ;;  %1057 = vmatpush.msra.mxu3 %v229_v16 }
  0xc1   :  { %360 = vmatpush.msra.mxu2 %v226_v15  ;;  %1058 = vmatpush.msra.mxu3 %v226_v15 }
  0xc3   :  { %361 = vmatpush.msra.mxu2 %v223_v14  ;;  %1059 = vmatpush.msra.mxu3 %v223_v14 }
  0xc4   :  { %1018 = vmatmul.msk.f32.vlgmr.msra.gmra.mxu2 %vm164_vm0, %v282_v22  ;;  %1023 = vmatmul.msk.f32.vlgmr.msra.gmra.mxu3 %vm164_vm0, %v287_v23 }
  0xcc   :  { %1019 = vmatmul.msk.f32.gmra.mxu2 %vm164_vm0, %v283_v26  ;;  %1024 = vmatmul.msk.f32.gmra.mxu3 %vm164_vm0, %v288_v25 }
  0xd4   :  { %1020 = vmatmul.msk.f32.gmra.mxu2 %vm164_vm0, %v284_v28  ;;  %1025 = vmatmul.msk.f32.gmra.mxu3 %vm164_vm0, %v289_v29 }
  0xdc   :  { %1021 = vmatmul.msk.f32.gmra.mxu2 %vm164_vm0, %v285_v31  ;;  %1026 = vmatmul.msk.f32.gmra.mxu3 %vm164_vm0, %v290_v32 }
  0xe4   :  { %1022 = vmatmul.msk.f32.gmra.mxu2 %vm164_vm0, %v286_v33  ;;  %1027 = vmatmul.msk.f32.gmra.mxu3 %vm164_vm0, %v291_v34 }
  0xec   :  { %1028 = vmatmul.msk.f32.gmra.mxu3 %vm164_vm0, %v292_v36 }
  0xf4   :  { %1029 = vmatmul.msk.f32.gmra.mxu3 %vm164_vm0, %v293_v37 }
  0xfc   :  { %1030 = vmatmul.msk.f32.gmra.mxu3 %vm164_vm0, %v294_v39 }
 0x104   :  { %1031 = vmatmul.msk.f32.gmra.mxu3 %vm164_vm0, %v295_v40 }
 0x10c   :  { %1032 = vmatmul.msk.f32.gmra.mxu3 %vm164_vm0, %v296_v42 }
 0x114   :  { %1033 = vmatmul.msk.f32.gmra.mxu3 %vm164_vm0, %v297_v43 }
 0x147   :  { %v363_v47 = vpop.f32.mrf.mxu2  ;;  %v378_v48 = vpop.f32.mrf.mxu3 }
 0x148   :  { %v1499_v49 = vadd.f32 %v363_v47, %v162_v46  ;;  %v1515_v0 = vadd.f32 %v378_v48, %v163_v51 }
 0x14a   :  { %v428_v50 = vsel %vm427_vm1, %v1499_v49, -inf  ;;  %v443_v4 = vsel %vm427_vm1, %v1515_v0, -inf }
 0x14b   :  { %429 = vmax.xlane.f32.xlu0 %v428_v50 }
 0x14f   :  { %v366_v52 = vpop.f32.mrf.mxu2  ;;  %v381_v53 = vpop.f32.mrf.mxu3 }
 0x150   :  { %v1503_v54 = vadd.f32 %v366_v52, %v163_v51  ;;  %v1531_v11 = vadd.f32 %v381_v53, %v162_v46 }
 0x152   :  { %v431_v55 = vsel %vm427_vm1, %v1503_v54, -inf  ;;  %v446_v14 = vsel %vm427_vm1, %v1531_v11, -inf }
 0x153   :  { %432 = vmax.xlane.f32.xlu0 %v431_v55 }
 0x157   :  { %v369_v56 = vpop.f32.mrf.mxu2  ;;  %v384_v57 = vpop.f32.mrf.mxu3 }
 0x158   :  { %v1507_v58 = vadd.f32 %v369_v56, %v162_v46  ;;  %v1539_v16 = vadd.f32 %v384_v57, %v163_v51 }
 0x15a   :  { %v434_v59 = vsel %vm427_vm1, %v1507_v58, -inf  ;;  %v449_v22 = vsel %vm427_vm1, %v1539_v16, -inf }
 0x15b   :  { %435 = vmax.xlane.f32.xlu1 %v434_v59 }
 0x15f   :  { %v372_v60 = vpop.f32.mrf.mxu2  ;;  %v387_v61 = vpop.f32.mrf.mxu3 }
 0x160   :  { %v1511_v62 = vadd.f32 %v372_v60, %v163_v51  ;;  %v1547_v23 = vadd.f32 %v387_v61, %v162_v46 }
 0x162   :  { %v437_v63 = vsel %vm427_vm1, %v1511_v62, -inf  ;;  %v452_v29 = vsel %vm427_vm1, %v1547_v23, -inf }
 0x163   :  { %438 = vmax.xlane.f32.xlu1 %v437_v63 }
 0x167   :  { %v390_v1 = vpop.f32.mrf.mxu3  ;;  %v375_v5 = vpop.f32.mrf.mxu2 }
 0x168   :  { %v1517_v2 = vadd.f32 %v390_v1, %v163_v51  ;;  %v1523_v6 = vadd.f32 %v375_v5, %v162_v46 }
 0x16a   :  { %v455_v3 = vsel %vm427_vm1, %v1517_v2, -inf  ;;  %v440_v10 = vsel %vm427_vm1, %v1523_v6, -inf }
 0x16b   :  { %456 = vmax.xlane.f32.xlu2 %v455_v3  ;;  %444 = vmax.xlane.f32.xlu1 %v443_v4 }
 0x16f   :  { %v393_v7 = vpop.f32.mrf.mxu3 }
 0x170   :  { %v1525_v8 = vadd.f32 %v393_v7, %v162_v46 }
 0x172   :  { %v458_v9 = vsel %vm427_vm1, %v1525_v8, -inf }
 0x173   :  { %459 = vmax.xlane.f32.xlu0 %v458_v9  ;;  %441 = vmax.xlane.f32.xlu2 %v440_v10 }
 0x177   :  { %v396_v12 = vpop.f32.mrf.mxu3 }
 0x178   :  { %v1533_v13 = vadd.f32 %v396_v12, %v163_v51 }
 0x17a   :  { %v461_v15 = vsel %vm427_vm1, %v1533_v13, -inf }
 0x17b   :  { %447 = vmax.xlane.f32.xlu0 %v446_v14  ;;  %462 = vmax.xlane.f32.xlu2 %v461_v15 }
 0x17f   :  { %v399_v17 = vpop.f32.mrf.mxu3 }
 0x180   :  { %v1541_v20 = vadd.f32 %v399_v17, %v162_v46 }
 0x182   :  { %v464_v21 = vsel %vm427_vm1, %v1541_v20, -inf }
 0x183   :  { %465 = vmax.xlane.f32.xlu1 %v464_v21  ;;  %450 = vmax.xlane.f32.xlu2 %v449_v22 }
 0x187   :  { %v402_v25 = vpop.f32.mrf.mxu3 }
 0x188   :  { %v1549_v26 = vadd.f32 %v402_v25, %v163_v51 }
 0x18a   :  { %v467_v28 = vsel %vm427_vm1, %v1549_v26, -inf }
 0x18b   :  { %468 = vmax.xlane.f32.xlu0 %v467_v28  ;;  %453 = vmax.xlane.f32.xlu1 %v452_v29 }
 0x18f   :  { %v405_v31 = vpop.f32.mrf.mxu3 }
 0x190   :  { %v1555_v32 = vadd.f32 %v405_v31, %v162_v46 }
 0x192   :  { %v470_v33 = vsel %vm427_vm1, %v1555_v32, -inf }
 0x193   :  { %471 = vmax.xlane.f32.xlu2 %v470_v33 }
 0x197   :  { %v408_v34 = vpop.f32.mrf.mxu3 }
 0x198   :  { %v1559_v36 = vadd.f32 %v408_v34, %v163_v51 }
 0x19a   :  { %v473_v37 = vsel %vm427_vm1, %v1559_v36, -inf }
 0x19b   :  { %474 = vmax.xlane.f32.xlu0 %v473_v37 }
 0x1be   :  { %v430_v39 = vpop.xlane.xlu0 %429 }
 0x1bf   :  { %v476_v40 = vsub.f32 %v1499_v49, %v430_v39 }
 0x1c1   :  { %v492_v42 = vmul.f32 1.442695, %v476_v40 }
 0x1c3   :  { %1082 = vpow2.f32 %v492_v42 }
 0x1c6   :  { %v433_v43 = vpop.xlane.xlu0 %432 }
 0x1c7   :  { %v477_v44 = vsub.f32 %v1503_v54, %v433_v43 }
 0x1c9   :  { %v1083_v45 = vpop.eup %1082  ;;  %v494_v46 = vmul.f32 1.442695, %v477_v44 }
 0x1ca   :  { %1034 = vmatmul.msk.f32.vlgmr.msrb.gmra.mxu0 %vm427_vm1, %v1083_v45  ;;  %v524_v47 = vsel %vm427_vm1, %v1083_v45, 0.0 }
 0x1cb   :  { %1084 = vpow2.f32 %v494_v46  ;;  %525 = vadd.xlane.f32.xlu1 %v524_v47 }
 0x1ce   :  { %v436_v48 = vpop.xlane.xlu1 %435 }
 0x1cf   :  { %v478_v50 = vsub.f32 %v1507_v58, %v436_v48 }
 0x1d1   :  { %v1085_v51 = vpop.eup %1084  ;;  %v496_v52 = vmul.f32 1.442695, %v478_v50 }
 0x1d2   :  { %1035 = vmatmul.msk.f32.gmra.mxu0 %vm427_vm1, %v1085_v51  ;;  %v527_v25 = vsel %vm427_vm1, %v1085_v51, 0.0 }
 0x1d3   :  { %1086 = vpow2.f32 %v496_v52 }
 0x1d6   :  { %v439_v49 = vpop.xlane.xlu1 %438 }
 0x1d7   :  { %v479_v53 = vsub.f32 %v1511_v62, %v439_v49 }
 0x1d9   :  { %v1087_v54 = vpop.eup %1086  ;;  %v498_v55 = vmul.f32 1.442695, %v479_v53 }
 0x1da   :  { %1036 = vmatmul.msk.f32.gmra.mxu0 %vm427_vm1, %v1087_v54  ;;  %v530_v56 = vsel %vm427_vm1, %v1087_v54, 0.0 }
 0x1db   :  { %1088 = vpow2.f32 %v498_v55  ;;  %531 = vadd.xlane.f32.xlu2 %v530_v56 }
 0x1de   :  { %v457_v57 = vpop.xlane.xlu2 %456  ;;  %v445_v59 = vpop.xlane.xlu1 %444 }
 0x1df   :  { %v485_v58 = vsub.f32 %v1517_v2, %v457_v57  ;;  %v481_v60 = vsub.f32 %v1515_v0, %v445_v59 }
 0x1e1   :  { %v1089_v61 = vpop.eup %1088  ;;  %v510_v63 = vmul.f32 1.442695, %v485_v58  ;;  %v502_v1 = vmul.f32 1.442695, %v481_v60 }
 0x1e2   :  { %1037 = vmatmul.msk.f32.gmra.mxu0 %vm427_vm1, %v1089_v61  ;;  %v533_v48 = vsel %vm427_vm1, %v1089_v61, 0.0 }
 0x1e3   :  { %1090 = vpow2.f32 %v510_v63 }
 0x1e4   :  { %1092 = vpow2.f32 %v502_v1 }
 0x1e6   :  { %v460_v62 = vpop.xlane.xlu0 %459  ;;  %v442_v3 = vpop.xlane.xlu2 %441 }
 0x1e7   :  { %v486_v4 = vsub.f32 %v1525_v8, %v460_v62  ;;  %v480_v5 = vsub.f32 %v1523_v6, %v442_v3 }
 0x1e9   :  { %v1577_v7 = vpop.eup %1090  ;;  %v512_v9 = vmul.f32 1.442695, %v486_v4  ;;  %v500_v10 = vmul.f32 1.442695, %v480_v5 }
 0x1ea   :  { %v1093_v2 = vpop.eup %1092  ;;  %1043 = vmatmul.msk.f32.vlgmr.msrb.gmra.mxu1 %vm427_vm1, %v1577_v7  ;;  %v551_v58 = vsel %vm427_vm1, %v1577_v7, 0.0 }
 0x1eb   :  { %1094 = vpow2.f32 %v512_v9  ;;  %v539_v0 = vsel %vm427_vm1, %v1093_v2, 0.0 }
 0x1ec   :  { %1096 = vpow2.f32 %v500_v10  ;;  %540 = vadd.xlane.f32.xlu0 %v539_v0 }
 0x1ee   :  { %v448_v12 = vpop.xlane.xlu0 %447  ;;  %v463_v14 = vpop.xlane.xlu2 %462 }
 0x1ef   :  { %v482_v15 = vsub.f32 %v1531_v11, %v448_v12  ;;  %v487_v8 = vsub.f32 %v1533_v13, %v463_v14 }
 0x1f1   :  { %v1584_v6 = vpop.eup %1094  ;;  %v504_v17 = vmul.f32 1.442695, %v482_v15  ;;  %v514_v21 = vmul.f32 1.442695, %v487_v8 }
 0x1f2   :  { %v1097_v22 = vpop.eup %1096  ;;  %1044 = vmatmul.msk.f32.gmra.mxu1 %vm427_vm1, %v1584_v6  ;;  %v554_v60 = vsel %vm427_vm1, %v1584_v6, 0.0 }
 0x1f3   :  { %1098 = vpow2.f32 %v504_v17  ;;  %1038 = vmatmul.msk.f32.gmra.mxu0 %vm427_vm1, %v1097_v22  ;;  %v536_v40 = vsel %vm427_vm1, %v1097_v22, 0.0 }
 0x1f4   :  { %1100 = vpow2.f32 %v514_v21  ;;  %528 = vadd.xlane.f32.xlu0 %v527_v25 }
 0x1f6   :  { %v466_v28 = vpop.xlane.xlu1 %465  ;;  %v451_v29 = vpop.xlane.xlu2 %450 }
 0x1f7   :  { %v488_v11 = vsub.f32 %v1541_v20, %v466_v28  ;;  %v483_v13 = vsub.f32 %v1539_v16, %v451_v29 }
 0x1f9   :  { %v1099_v31 = vpop.eup %1098  ;;  %v516_v33 = vmul.f32 1.442695, %v488_v11  ;;  %v506_v34 = vmul.f32 1.442695, %v483_v13 }
 0x1fa   :  { %v1101_v37 = vpop.eup %1100  ;;  %v542_v39 = vsel %vm427_vm1, %v1099_v31, 0.0 }
 0x1fb   :  { %1102 = vpow2.f32 %v516_v33  ;;  %1039 = vmatmul.msk.f32.gmra.mxu0 %vm427_vm1, %v1093_v2  ;;  %1045 = vmatmul.msk.f32.gmra.mxu1 %vm427_vm1, %v1101_v37  ;;  %v557_v63 = vsel %vm427_vm1, %v1101_v37, 0.0 }
 0x1fc   :  { %1104 = vpow2.f32 %v506_v34  ;;  %543 = vadd.xlane.f32.xlu1 %v542_v39  ;;  %537 = vadd.xlane.f32.xlu0 %v536_v40 }
 0x1fe   :  { %v469_v42 = vpop.xlane.xlu0 %468  ;;  %v454_v20 = vpop.xlane.xlu1 %453 }
 0x1ff   :  { %v489_v16 = vsub.f32 %v1549_v26, %v469_v42  ;;  %v484_v43 = vsub.f32 %v1547_v23, %v454_v20  ;;  %v153_v42 = vld [vmem:[#allocation10 + $0x18] sm:$0xff] }
 0x200   :  { %973 = vmatpush.msrb.mxu2 %v153_v42 }
 0x201   :  { %v1103_v44 = vpop.eup %1102  ;;  %v518_v45 = vmul.f32 1.442695, %v489_v16  ;;  %v508_v46 = vmul.f32 1.442695, %v484_v43 }
 0x202   :  { %v1105_v47 = vpop.eup %1104  ;;  %v560_v53 = vsel %vm427_vm1, %v1103_v44, 0.0 }
 0x203   :  { %1106 = vpow2.f32 %v518_v45  ;;  %1040 = vmatmul.msk.f32.gmra.mxu0 %vm427_vm1, %v1099_v31  ;;  %1046 = vmatmul.msk.f32.gmra.mxu1 %vm427_vm1, %v1103_v44  ;;  %v545_v50 = vsel %vm427_vm1, %v1105_v47, 0.0 }
 0x204   :  { %1108 = vpow2.f32 %v508_v46  ;;  %534 = vadd.xlane.f32.xlu1 %v533_v48  ;;  %546 = vadd.xlane.f32.xlu2 %v545_v50 }
 0x206   :  { %v472_v51 = vpop.xlane.xlu2 %471 }
 0x207   :  { %v490_v26 = vsub.f32 %v1555_v32, %v472_v51 }
 0x209   :  { %v1107_v23 = vpop.eup %1106  ;;  %v520_v52 = vmul.f32 1.442695, %v490_v26 }
 0x20a   :  { %v1109_v49 = vpop.eup %1108  ;;  %v563_v1 = vsel %vm427_vm1, %v1107_v23, 0.0 }
 0x20b   :  { %1110 = vpow2.f32 %v520_v52  ;;  %1041 = vmatmul.msk.f32.gmra.mxu0 %vm427_vm1, %v1105_v47  ;;  %1047 = vmatmul.msk.f32.gmra.mxu1 %vm427_vm1, %v1107_v23  ;;  %v548_v54 = vsel %vm427_vm1, %v1109_v49, 0.0  ;;  %v152_v23 = vld [vmem:[#allocation10 + $0x10] sm:$0xff] }
 0x20c   :  { %561 = vadd.xlane.f32.xlu1 %v560_v53  ;;  %549 = vadd.xlane.f32.xlu2 %v548_v54 }
 0x20d   :  { %974 = vmatpush.msrb.mxu2 %v152_v23 }
 0x20e   :  { %v475_v55 = vpop.xlane.xlu0 %474 }
 0x20f   :  { %v491_v56 = vsub.f32 %v1559_v36, %v475_v55 }
 0x211   :  { %v1111_v57 = vpop.eup %1110  ;;  %v522_v59 = vmul.f32 1.442695, %v491_v56 }
 0x212   :  { %v566_v32 = vsel %vm427_vm1, %v1111_v57, 0.0 }
 0x213   :  { %1112 = vpow2.f32 %v522_v59  ;;  %1042 = vmatmul.msk.f32.gmra.mxu0 %vm427_vm1, %v1109_v49  ;;  %1048 = vmatmul.msk.f32.gmra.mxu1 %vm427_vm1, %v1111_v57 }
 0x214   :  { %552 = vadd.xlane.f32.xlu1 %v551_v58  ;;  %555 = vadd.xlane.f32.xlu2 %v554_v60 }
 0x215   :  { %567 = vadd.xlane.f32.xlu0 %v566_v32 }
 0x219   :  { %v1113_v61 = vpop.eup %1112 }
 0x21a   :  { %v569_v36 = vsel %vm427_vm1, %v1113_v61, 0.0 }
 0x21b   :  { %1049 = vmatmul.msk.f32.gmra.mxu1 %vm427_vm1, %v1113_v61 }
 0x21c   :  { %570 = vadd.xlane.f32.xlu1 %v569_v36  ;;  %558 = vadd.xlane.f32.xlu2 %v557_v63 }
 0x21d   :  { %564 = vadd.xlane.f32.xlu0 %v563_v1 }
 0x23e   :  { %v526_v4 = vpop.xlane.xlu1 %525 }
 0x23f   :  { %v712_v31 = vand.u32 2147483648, %v526_v4  ;;  %vm706_vm6 = vweird.f32 %v526_v4  ;;  %v710_v34 = vand.u32 2147483647, %v526_v4 }
 0x241   :  { %v713_v43 = vor.u32 1.1754944e-38, %v712_v31  ;;  %vm711_vm9 = vcmp.eq.f32.partialorder %v710_v34, 8.507059e+37 }
 0x247   :  { %v637_v62 = vpop.f32.mrf.mxu0 }
 0x248   :  { %v685_v52 = vmul.f32 %v1451_v18, %v637_v62 }
 0x24e   :  { %v532_v3 = vpop.xlane.xlu2 %531 }
 0x24f   :  { %1114 = vrcp.f32 %v532_v3  ;;  %v640_v5 = vpop.f32.mrf.mxu0  ;;  %v740_v28 = vand.u32 2147483648, %v532_v3  ;;  %vm734_vm4 = vweird.f32 %v532_v3  ;;  %v738_v11 = vand.u32 2147483647, %v532_v3 }
 0x250   :  { %1116 = vrcp.f32 %v526_v4  ;;  %v1650_v59 = vmul.f32 %v1451_v18, %v640_v5 }
 0x251   :  { %v741_v40 = vor.u32 1.1754944e-38, %v740_v28  ;;  %vm739_vm8 = vcmp.eq.f32.partialorder %v738_v11, 8.507059e+37 }
 0x255   :  { %v1115_v7 = vpop.eup %1114 }
 0x256   :  { %v1117_v9 = vpop.eup %1116  ;;  %v730_v10 = vmul.f32 %v1115_v7, %v532_v3  ;;  %vm735_vm2 = vweird.f32 %v1115_v7 }
 0x257   :  { %v702_v2 = vmul.f32 %v1117_v9, %v526_v4  ;;  %v643_v0 = vpop.f32.mrf.mxu0  ;;  %vm707_vm3 = vweird.f32 %v1117_v9  ;;  %vm736_vm5 = vmor %vm734_vm4, %vm735_vm2 }
 0x258   :  { %v731_v14 = vsub.f32 1.0, %v730_v10  ;;  %vm1629_vm7 = vmor %vm706_vm6, %vm707_vm3  ;;  %v687_v50 = vmul.f32 %v1465_v27, %v643_v0 }
 0x259   :  { %v703_v15 = vsub.f32 1.0, %v702_v2 }
 0x25a   :  { %v732_v8 = vmul.f32 %v1115_v7, %v731_v14 }
 0x25b   :  { %v704_v6 = vmul.f32 %v1117_v9, %v703_v15 }
 0x25c   :  { %v733_v22 = vadd.f32 %v1115_v7, %v732_v8 }
 0x25d   :  { %v705_v29 = vadd.f32 %v1117_v9, %v704_v6 }
 0x25e   :  { %v737_v37 = vsel %vm736_vm5, %v1115_v7, %v733_v22 }
 0x25f   :  { %v1619_v12 = vpop.xlane.xlu0 %540  ;;  %v646_v25 = vpop.f32.mrf.mxu0  ;;  %v709_v16 = vsel %vm1629_vm7, %v1117_v9, %v705_v29  ;;  %v742_v44 = vsel %vm739_vm8, %v741_v40, %v737_v37  ;;  %v151_v29 = vld [vmem:[#allocation10 + $0x8] sm:$0xff] }
 0x260   :  { %1118 = vrcp.f32 %v1619_v12  ;;  %v714_v26 = vsel %vm711_vm9, %v713_v43, %v709_v16  ;;  %v927_v49 = vmul.f32 %v742_v44, %v687_v50  ;;  %v780_v57 = vand.u32 2147483647, %v1619_v12  ;;  %975 = vmatpush.msrb.mxu2 %v151_v29  ;;  %v150_v29 = vld [vmem:[#allocation10] sm:$0xff] }
 0x261   :  { %v925_v55 = vmul.f32 %v714_v26, %v685_v52  ;;  %v782_v32 = vand.u32 2147483648, %v1619_v12  ;;  %vm776_vm10 = vweird.f32 %v1619_v12  ;;  %v1659_v61 = vmul.f32 %v1465_v27, %v646_v25 }
 0x262   :  { %vm1674_vm12 = vcmp.eq.f32.partialorder %v780_v57, 8.507059e+37  ;;  %976 = vmatpush.msrb.mxu2 %v150_v29 }
 0x263   :  { %v1655_v60 = vadd.f32 %v927_v49, %v925_v55  ;;  %v783_v2 = vor.u32 1.1754944e-38, %v782_v32 }
 0x266   :  { %v1624_v21 = vpop.eup %1118 }
 0x267   :  { %v1622_v17 = vpop.xlane.xlu0 %528  ;;  %v664_v13 = vpop.f32.mrf.mxu1  ;;  %v772_v33 = vmul.f32 %v1624_v21, %v1619_v12  ;;  %vm777_vm11 = vweird.f32 %v1624_v21 }
 0x268   :  { %1120 = vrcp.f32 %v1622_v17  ;;  %v724_v36 = vand.u32 2147483647, %v1622_v17  ;;  %v726_v5 = vand.u32 2147483648, %v1622_v17  ;;  %vm720_vm13 = vweird.f32 %v1622_v17  ;;  %vm1690_vm15 = vmor %vm776_vm10, %vm777_vm11 }
 0x269   :  { %v773_v45 = vsub.f32 1.0, %v772_v33  ;;  %v1686_v14 = vmul.f32 %v1471_v30, %v664_v13 }
 0x26a   :  { %vm1681_vm14 = vcmp.eq.f32.partialorder %v724_v36, 8.507059e+37  ;;  %v727_v11 = vor.u32 1.1754944e-38, %v726_v5 }
 0x26b   :  { %v774_v53 = vmul.f32 %v1624_v21, %v773_v45 }
 0x26d   :  { %v775_v4 = vadd.f32 %v1624_v21, %v774_v53 }
 0x26e   :  { %v1633_v20 = vpop.eup %1120 }
 0x26f   :  { %v716_v46 = vmul.f32 %v1633_v20, %v1622_v17  ;;  %v1639_v47 = vpop.xlane.xlu1 %543  ;;  %v1641_v48 = vpop.xlane.xlu0 %537  ;;  %vm721_vm1 = vweird.f32 %v1633_v20  ;;  %v779_v28 = vsel %vm1690_vm15, %v1624_v21, %v775_v4 }
 0x270   :  { %1122 = vrcp.f32 %v1639_v47  ;;  %v649_v51 = vpop.f32.mrf.mxu0  ;;  %v667_v56 = vpop.f32.mrf.mxu1  ;;  %v766_v9 = vand.u32 2147483647, %v1641_v48  ;;  %v768_v25 = vand.u32 2147483648, %v1641_v48  ;;  %vm790_vm2 = vweird.f32 %v1639_v47  ;;  %vm1710_vm6 = vmor %vm720_vm13, %vm721_vm1 }
 0x271   :  { %1124 = vrcp.f32 %v1641_v48  ;;  %v717_v54 = vsub.f32 1.0, %v716_v46  ;;  %vm762_vm4 = vweird.f32 %v1641_v48  ;;  %v689_v12 = vmul.f32 %v1453_v19, %v649_v51 }
 0x272   :  { %vm1703_vm5 = vcmp.eq.f32.partialorder %v766_v9, 8.507059e+37  ;;  %v794_v33 = vand.u32 2147483647, %v1639_v47  ;;  %v1716_v40 = vmul.f32 %v1481_v35, %v667_v56  ;;  %v784_v42 = vsel %vm1674_vm12, %v783_v2, %v779_v28 }
 0x273   :  { %v718_v1 = vmul.f32 %v1633_v20, %v717_v54  ;;  %v769_v17 = vor.u32 1.1754944e-38, %v768_v25  ;;  %v796_v51 = vand.u32 2147483648, %v1639_v47 }
 0x274   :  { %vm1743_vm8 = vcmp.eq.f32.partialorder %v794_v33, 8.507059e+37 }
 0x275   :  { %v719_v22 = vadd.f32 %v1633_v20, %v718_v1 }
 0x276   :  { %v1653_v58 = vpop.eup %1122 }
 0x277   :  { %v1125_v63 = vpop.eup %1124  ;;  %v786_v18 = vmul.f32 %v1653_v58, %v1639_v47  ;;  %v1665_v62 = vpop.xlane.xlu1 %534  ;;  %v723_v46 = vsel %vm1710_vm6, %v1633_v20, %v719_v22  ;;  %vm791_vm9 = vweird.f32 %v1653_v58 }
 0x278   :  { %v1667_v3 = vpop.xlane.xlu2 %546  ;;  %v758_v27 = vmul.f32 %v1125_v63, %v1641_v48  ;;  %1126 = vrcp.f32 %v1665_v62  ;;  %v652_v10 = vpop.f32.mrf.mxu0  ;;  %vm763_vm3 = vweird.f32 %v1125_v63  ;;  %v752_v23 = vand.u32 2147483647, %v1665_v62  ;;  %vm1763_vm15 = vmor %vm790_vm2, %vm791_vm9 }
 0x279   :  { %1128 = vrcp.f32 %v1667_v3  ;;  %v787_v15 = vsub.f32 1.0, %v786_v18  ;;  %v670_v16 = vpop.f32.mrf.mxu1  ;;  %vm1722_vm7 = vmor %vm762_vm4, %vm763_vm3  ;;  %v754_v53 = vand.u32 2147483648, %v1665_v62  ;;  %v690_v55 = vmul.f32 %v1453_v19, %v652_v10 }
 0x27a   :  { %v759_v8 = vsub.f32 1.0, %v758_v27  ;;  %v728_v36 = vsel %vm1681_vm14, %v727_v11, %v723_v46  ;;  %vm748_vm11 = vweird.f32 %v1665_v62  ;;  %vm1755_vm12 = vcmp.eq.f32.partialorder %v752_v23, 8.507059e+37 }
 0x27b   :  { %v788_v37 = vmul.f32 %v1653_v58, %v787_v15  ;;  %v797_v18 = vor.u32 1.1754944e-38, %v796_v51  ;;  %v810_v19 = vand.u32 2147483648, %v1667_v3  ;;  %v755_v27 = vor.u32 1.1754944e-38, %v754_v53 }
 0x27c   :  { %v760_v13 = vmul.f32 %v1125_v63, %v759_v8  ;;  %vm804_vm13 = vweird.f32 %v1667_v3  ;;  %v926_v10 = vmul.f32 %v728_v36, %v1650_v59  ;;  %v1772_v2 = vmul.f32 %v784_v42, %v690_v55 }
 0x27d   :  { %v789_v56 = vadd.f32 %v1653_v58, %v788_v37  ;;  %v1782_v22 = vmul.f32 %v1481_v35, %v670_v16  ;;  %v811_v35 = vor.u32 1.1754944e-38, %v810_v19 }
 0x27e   :  { %v1127_v34 = vpop.eup %1126  ;;  %v761_v39 = vadd.f32 %v1125_v63, %v760_v13 }
 0x27f   :  { %v1720_v43 = vpop.eup %1128  ;;  %v744_v45 = vmul.f32 %v1127_v34, %v1665_v62  ;;  %v1730_v48 = vpop.xlane.xlu1 %561  ;;  %vm749_vm10 = vweird.f32 %v1127_v34  ;;  %v808_v62 = vand.u32 2147483647, %v1667_v3  ;;  %v793_v47 = vsel %vm1763_vm15, %v1653_v58, %v789_v56 }
 0x280   :  { %v1732_v50 = vpop.xlane.xlu2 %549  ;;  %v765_v26 = vsel %vm1722_vm7, %v1125_v63, %v761_v39  ;;  %v800_v52 = vmul.f32 %v1720_v43, %v1667_v3  ;;  %1130 = vrcp.f32 %v1730_v48  ;;  %v655_v63 = vpop.f32.mrf.mxu0  ;;  %vm750_vm14 = vmor %vm748_vm11, %vm749_vm10  ;;  %v878_v13 = vand.u32 2147483647, %v1730_v48 }
 0x281   :  { %v745_v49 = vsub.f32 1.0, %v744_v45  ;;  %1132 = vrcp.f32 %v1732_v50  ;;  %v770_v54 = vsel %vm1703_vm5, %v769_v17, %v765_v26  ;;  %v691_v0 = vmul.f32 %v1459_v24, %v655_v63  ;;  %v673_v58 = vpop.f32.mrf.mxu1 }
 0x282   :  { %v801_v32 = vsub.f32 1.0, %v800_v52  ;;  %v929_v4 = vmul.f32 %v770_v54, %v689_v12  ;;  %v880_v21 = vand.u32 2147483648, %v1730_v48  ;;  %vm1800_vm1 = vcmp.eq.f32.partialorder %v808_v62, 8.507059e+37 }
 0x283   :  { %v746_v57 = vmul.f32 %v1127_v34, %v745_v49  ;;  %vm874_vm2 = vweird.f32 %v1730_v48  ;;  %vm805_vm3 = vweird.f32 %v1720_v43  ;;  %v697_v17 = vmul.f32 %v1487_v38, %v673_v58 }
 0x284   :  { %v802_v8 = vmul.f32 %v1720_v43, %v801_v32  ;;  %v943_v31 = vadd.f32 %v1655_v60, %v929_v4  ;;  %vm1814_vm5 = vcmp.eq.f32.partialorder %v878_v13, 8.507059e+37  ;;  %v881_v46 = vor.u32 1.1754944e-38, %v880_v21  ;;  %vm1828_vm6 = vmor %vm804_vm13, %vm805_vm3  ;;  %v1146_v21 = vld [vmem:[#allocation11 + $0x6] ss:$0 sm:$0xff] }
 0x285   :  { %v747_v5 = vadd.f32 %v1127_v34, %v746_v57  ;;  %v822_v54 = vand.u32 2147483647, %v1732_v50  ;;  %v824_v32 = vand.u32 2147483648, %v1732_v50  ;;  %vm818_vm11 = vweird.f32 %v1732_v50 }
 0x286   :  { %v1768_v9 = vpop.eup %1130  ;;  %v803_v44 = vadd.f32 %v1720_v43, %v802_v8 }
 0x287   :  { %v1778_v15 = vpop.eup %1132  ;;  %v751_v6 = vsel %vm750_vm14, %v1127_v34, %v747_v5  ;;  %v870_v25 = vmul.f32 %v1768_v9, %v1730_v48  ;;  %v1786_v59 = vpop.xlane.xlu1 %552  ;;  %v798_v34 = vsel %vm1743_vm8, %v797_v18, %v793_v47  ;;  %vm875_vm4 = vweird.f32 %v1768_v9 }
 0x288   :  { %v1788_v28 = vpop.xlane.xlu2 %555  ;;  %v756_v11 = vsel %vm1755_vm12, %v755_v27, %v751_v6  ;;  %1134 = vrcp.f32 %v1786_v59  ;;  %v1794_v12 = vpop.xlane.xlu0 %567  ;;  %v814_v42 = vmul.f32 %v1778_v15, %v1732_v50  ;;  %v931_v16 = vmul.f32 %v798_v34, %v691_v0  ;;  %vm1835_vm7 = vmor %vm874_vm2, %vm875_vm4 }
 0x289   :  { %v871_v33 = vsub.f32 1.0, %v870_v25  ;;  %v928_v39 = vmul.f32 %v756_v11, %v1659_v61  ;;  %1136 = vrcp.f32 %v1794_v12  ;;  %v836_v51 = vand.u32 2147483647, %v1786_v59  ;;  %v658_v23 = vpop.f32.mrf.mxu0  ;;  %v1874_v0 = vpop.f32.mrf.mxu1 }
 0x28a   :  { %1138 = vrcp.f32 %v1788_v28  ;;  %v838_v26 = vand.u32 2147483648, %v1786_v59  ;;  %v815_v38 = vsub.f32 1.0, %v814_v42  ;;  %v1824_v53 = vadd.f32 %v943_v31, %v931_v16 }
 0x28b   :  { %v872_v60 = vmul.f32 %v1768_v9, %v871_v33  ;;  %v942_v49 = vadd.f32 %v928_v39, %v926_v10  ;;  %vm832_vm8 = vweird.f32 %v1786_v59  ;;  %v807_v3 = vsel %vm1828_vm6, %v1720_v43, %v803_v44 }
 0x28c   :  { %v850_v63 = vand.u32 2147483647, %v1788_v28  ;;  %v692_v1 = vmul.f32 %v1459_v24, %v658_v23  ;;  %vm1858_vm9 = vcmp.eq.f32.partialorder %v836_v51, 8.507059e+37  ;;  %v839_v4 = vor.u32 1.1754944e-38, %v838_v26 }
 0x28d   :  { %v873_v45 = vadd.f32 %v1768_v9, %v872_v60  ;;  %v852_v27 = vand.u32 2147483648, %v1788_v28  ;;  %v944_v24 = vadd.f32 %v942_v49, %v1772_v2  ;;  %vm846_vm10 = vweird.f32 %v1788_v28 }
 0x28e   :  { %v1822_v52 = vpop.eup %1134  ;;  %v812_v10 = vsel %vm1800_vm1, %v811_v35, %v807_v3  ;;  %vm1884_vm13 = vcmp.eq.f32.partialorder %v850_v63, 8.507059e+37  ;;  %vm902_vm15 = vweird.f32 %v1794_v12  ;;  %vm1892_vm14 = vcmp.eq.f32.partialorder %v822_v54, 8.507059e+37 }
 0x28f   :  { %v828_v56 = vmul.f32 %v1822_v52, %v1786_v59  ;;  %v1845_v57 = vpop.xlane.xlu1 %570  ;;  %v1848_v36 = vpop.eup %1136  ;;  %v877_v48 = vsel %vm1835_vm7, %v1768_v9, %v873_v45  ;;  %v816_v9 = vmul.f32 %v1778_v15, %v815_v38  ;;  %vm833_vm12 = vweird.f32 %v1822_v52 }
 0x290   :  { %1140 = vrcp.f32 %v1845_v57  ;;  %v1856_v18 = vpop.xlane.xlu0 %564  ;;  %v898_v5 = vmul.f32 %v1848_v36, %v1794_v12  ;;  %v1865_v7 = vpop.xlane.xlu2 %558  ;;  %v882_v47 = vsel %vm1814_vm5, %v881_v46, %v877_v48  ;;  %v932_v29 = vmul.f32 %v812_v10, %v692_v1  ;;  %vm1902_vm1 = vmor %vm832_vm8, %vm833_vm12 }
 0x291   :  { %v829_v19 = vsub.f32 1.0, %v828_v56  ;;  %v1867_v62 = vpop.eup %1138  ;;  %1142 = vrcp.f32 %v1856_v18  ;;  %v853_v13 = vor.u32 1.1754944e-38, %v852_v27  ;;  %v920_v35 = vand.u32 2147483647, %v1845_v57  ;;  %v661_v44 = vpop.f32.mrf.mxu0 }
 0x292   :  { %v842_v2 = vmul.f32 %v1867_v62, %v1788_v28  ;;  %v899_v6 = vsub.f32 1.0, %v898_v5  ;;  %1144 = vrcp.f32 %v1865_v7  ;;  %v1898_v34 = vmul.f32 %v882_v47, %v697_v17  ;;  %v679_v63 = vpop.f32.mrf.mxu1 }
 0x293   :  { %v830_v8 = vmul.f32 %v1822_v52, %v829_v19  ;;  %v1906_v37 = vadd.f32 %v944_v24, %v932_v29  ;;  %v922_v39 = vand.u32 2147483648, %v1845_v57  ;;  %v892_v42 = vand.u32 2147483647, %v1856_v18 }
 0x294   :  { %v843_v58 = vsub.f32 1.0, %v842_v2  ;;  %vm847_vm2 = vweird.f32 %v1867_v62  ;;  %vm888_vm3 = vweird.f32 %v1856_v18  ;;  %v900_v61 = vmul.f32 %v1848_v36, %v899_v6 }
 0x295   :  { %v831_v11 = vadd.f32 %v1822_v52, %v830_v8  ;;  %v894_v45 = vand.u32 2147483648, %v1856_v18  ;;  %v864_v46 = vand.u32 2147483647, %v1865_v7  ;;  %v866_v51 = vand.u32 2147483648, %v1865_v7  ;;  %vm1938_vm7 = vmor %vm846_vm10, %vm847_vm2 }
 0x296   :  { %v1896_v33 = vpop.eup %1140  ;;  %v844_v16 = vmul.f32 %v1867_v62, %v843_v58  ;;  %vm860_vm4 = vweird.f32 %v1865_v7  ;;  %v817_v49 = vadd.f32 %v1778_v15, %v816_v9  ;;  %v693_v54 = vmul.f32 %v1471_v30, %v661_v44 }
 0x297   :  { %v835_v60 = vsel %vm1902_vm1, %v1822_v52, %v831_v11  ;;  %v912_v59 = vmul.f32 %v1896_v33, %v1845_v57  ;;  %v1918_v17 = vpop.eup %1142  ;;  %vm819_vm6 = vweird.f32 %v1778_v15  ;;  %vm916_vm8 = vweird.f32 %v1845_v57 }
 0x298   :  { %v845_v26 = vadd.f32 %v1867_v62, %v844_v16  ;;  %v884_v52 = vmul.f32 %v1918_v17, %v1856_v18  ;;  %v1145_v38 = vpop.eup %1144  ;;  %v840_v20 = vsel %vm1858_vm9, %v839_v4, %v835_v60  ;;  %vm889_vm5 = vweird.f32 %v1918_v17  ;;  %vm820_vm12 = vmor %vm818_vm11, %vm819_vm6 }
 0x299   :  { %v913_v23 = vsub.f32 1.0, %v912_v59  ;;  %v856_v48 = vmul.f32 %v1145_v38, %v1865_v7  ;;  %v825_v30 = vor.u32 1.1754944e-38, %v824_v32  ;;  %vm861_vm9 = vweird.f32 %v1145_v38 }
 0x29a   :  { %v885_v3 = vsub.f32 1.0, %v884_v52  ;;  %v849_v28 = vsel %vm1938_vm7, %v1867_v62, %v845_v26  ;;  %v901_v1 = vadd.f32 %v1848_v36, %v900_v61  ;;  %vm903_vm10 = vweird.f32 %v1848_v36  ;;  %vm862_vm2 = vmor %vm860_vm4, %vm861_vm9 }
 0x29b   :  { %v914_v56 = vmul.f32 %v1896_v33, %v913_v23  ;;  %v857_v43 = vsub.f32 1.0, %v856_v48  ;;  %v821_v4 = vsel %vm820_vm12, %v1778_v15, %v817_v49  ;;  %v854_v32 = vsel %vm1884_vm13, %v853_v13, %v849_v28  ;;  %vm1963_vm11 = vmor %vm902_vm15, %vm903_vm10 }
 0x29c   :  { %v886_v19 = vmul.f32 %v1918_v17, %v885_v3  ;;  %v826_v50 = vsel %vm1892_vm14, %v825_v30, %v821_v4  ;;  %v935_v5 = vmul.f32 %v854_v32, %v1716_v40  ;;  %v906_v62 = vand.u32 2147483647, %v1794_v12  ;;  %vm1979_vm15 = vmor %vm888_vm3, %vm889_vm5 }
 0x29d   :  { %v908_v24 = vand.u32 2147483648, %v1794_v12  ;;  %v858_v9 = vmul.f32 %v1145_v38, %v857_v43  ;;  %v933_v10 = vmul.f32 %v826_v50, %v693_v54  ;;  %v905_v47 = vsel %vm1963_vm11, %v1848_v36, %v901_v1 }
 0x29e   :  { %v887_v15 = vadd.f32 %v1918_v17, %v886_v19  ;;  %v934_v40 = vmul.f32 %v840_v20, %v1686_v14  ;;  %vm917_vm13 = vweird.f32 %v1896_v33  ;;  %vm907_vm14 = vcmp.eq.f32.partialorder %v906_v62, 8.507059e+37 }
 0x29f   :  { %v909_v12 = vor.u32 1.1754944e-38, %v908_v24  ;;  %v859_v6 = vadd.f32 %v1145_v38, %v858_v9  ;;  %v947_v36 = vadd.f32 %v1824_v53, %v933_v10  ;;  %v915_v14 = vadd.f32 %v1896_v33, %v914_v56  ;;  %vm918_vm5 = vmor %vm916_vm8, %vm917_vm13 }
 0x2a0   :  { %v891_v2 = vsel %vm1979_vm15, %v1918_v17, %v887_v15  ;;  %vm893_vm1 = vcmp.eq.f32.partialorder %v892_v42, 8.507059e+37  ;;  %v895_v25 = vor.u32 1.1754944e-38, %v894_v45  ;;  %v867_v18 = vor.u32 1.1754944e-38, %v866_v51 }
 0x2a1   :  { %v910_v29 = vsel %vm907_vm14, %v909_v12, %v905_v47  ;;  %v863_v11 = vsel %vm862_vm2, %v1145_v38, %v859_v6  ;;  %vm865_vm3 = vcmp.eq.f32.partialorder %v864_v46, 8.507059e+37  ;;  %v949_v58 = vadd.f32 %v947_v36, %v935_v5  ;;  %v1147_v46 = vld [vmem:[#allocation11 + $0x7] ss:$0 sm:$0xff] }
 0x2a2   :  { %v699_v13 = vmul.f32 %v1493_v41, %v679_v63  ;;  %v948_v31 = vadd.f32 %v1906_v37, %v934_v40  ;;  %v698_v53 = vmul.f32 %v1146_v21, %v1874_v0  ;;  %v896_v42 = vsel %vm893_vm1, %v895_v25, %v891_v2  ;;  %v682_v37 = vpop.f32.mrf.mxu1 }
 0x2a3   :  { %v868_v7 = vsel %vm865_vm3, %v867_v18, %v863_v11  ;;  %v951_v59 = vadd.f32 %v949_v58, %v1898_v34  ;;  %v919_v44 = vsel %vm918_vm5, %v1896_v33, %v915_v14  ;;  %v923_v41 = vor.u32 1.1754944e-38, %v922_v39 }
 0x2a4   :  { %v936_v16 = vmul.f32 %v868_v7, %v1782_v22  ;;  %v939_v60 = vmul.f32 %v910_v29, %v699_v13  ;;  %vm921_vm4 = vcmp.eq.f32.partialorder %v920_v35, 8.507059e+37  ;;  %v938_v0 = vmul.f32 %v896_v42, %v698_v53 }
 0x2a5   :  { %v924_v45 = vsel %vm921_vm4, %v923_v41, %v919_v44  ;;  %v700_v51 = vmul.f32 %v1147_v46, %v682_v37 }
 0x2a6   :  { %v953_v17 = vadd.f32 %v951_v59, %v939_v60  ;;  %v950_v61 = vadd.f32 %v948_v31, %v936_v16 }
 0x2a7   :  { %v940_v26 = vmul.f32 %v924_v45, %v700_v51 }
 0x2a8   :  { %1050 = vmatmul.msk.f32.vlgmr.msrb.gmra.mxu2 %vm164_vm0, %v953_v17  ;;  %v952_v22 = vadd.f32 %v950_v61, %v938_v0 }
 0x2aa   :  { %v954_v34 = vadd.f32 %v952_v22, %v940_v26 }
 0x2b0   :  { %1051 = vmatmul.msk.f32.gmra.mxu2 %vm164_vm0, %v954_v34 }
 0x32b   :  { %v978_v33 = vpop.f32.mrf.mxu2 }
 0x32c   :  { %984 = vst.msk [vmem:[#allocation14] sm:$0xff] %vm164_vm0, %v978_v33 }
 0x333   :  { %v981_v57 = vpop.f32.mrf.mxu2 }
 0x334   :  { %985 = vst.msk [vmem:[#allocation14 + $0x8] sm:$0xff] %vm164_vm0, %v981_v57 }
 0x335   :  { %998 = dma.vmem_to_hbm [thread:$0]  %s991_s13, 256, %s993_s3, [#allocation4], %s1351_s9, %s1351_s9, %s1352_s10  }
 0x336   :  { %1348 = dma.done.wait [#allocation4], 256  }
 0x337   :  { %1349 = vsyncadd [#allocation4], 4294967040 }
 0x338   :  { %1003 = vsyncpa [#allocation3], 1 }
 0x339   :  { %1004 = vsyncpa [#allocation6], 1 }
 0x33a   :  { %1005 = vsyncpa [#allocation9], 1 }
 0x33b   :  { %1006 = vsyncpa [#allocation12], 1 }
 0x33c   :  { %1007 = vsyncpa [#allocation4], 1 }

</bundles_post_ra>
